<compile_context>
chip_gen: v7x
topology: tpu7x:2x2x1
jax: 0.10.0
libtpu: 0.0.40
codegen_flags: <defaults>
</compile_context>

<pallas_src>
import functools
import math

import jax
import jax.numpy as jnp
from jax.experimental import pallas as pl
from jax.experimental.pallas import tpu as pltpu


def _vmem_capacity_bytes():
    """Per-core VMEM capacity; conservative fallback (v7x) if the query fails."""
    try:
        info = pltpu.get_tpu_info()
        cap = getattr(info, "vmem_capacity_bytes", None)
        if cap:
            return int(cap)
    except Exception:
        pass
    return 64 * 1024 * 1024


def _vmem_estimate(block_b, L, H, in_bytes, out_bytes):
    """Rough per-step VMEM footprint: double-buffered I/O + f32 intermediates."""
    qkv = 3 * block_b * L * H * in_bytes            # q, k, v blocks
    out = block_b * L * H * out_bytes               # output block
    params = H * H * in_bytes + H * 4               # wo (bf16) + bo (f32)
    scores = block_b * L * L * 4                    # f32 scores / probs
    att = block_b * L * H * 4                       # f32 attention output
    return 2 * (qkv + out + params) + scores + att + (1 << 20)   # +1 MiB slack


def _pick_block_b(B, L, H, in_bytes, out_bytes, vmem_budget, target_steps=8):
    """Largest divisor of B giving >= target_steps grid steps (when B allows)
    and fitting the VMEM budget.  Falls back to block_b = 1."""
    best = 1
    min_steps = min(target_steps, B)
    for d in range(1, B + 1):
        if B % d != 0:
            continue
        if B // d < min_steps:
            continue
        if _vmem_estimate(d, L, H, in_bytes, out_bytes) > vmem_budget:
            continue
        best = max(best, d)
    return best


def self_attention_kernel(q_ref, k_ref, v_ref, wo_ref, bo_ref, o_ref, *, scale):
    """One batch chunk per grid step.

    q/k/v refs : (Bt, L, H) bf16
    wo ref     : (H, H) bf16  stored as (in, out) so y = x @ W + b (== torch x @ W.T + b)
    bo ref     : (1, H) f32
    o ref      : (Bt, L, H) caller dtype
    """
    q = q_ref[...]
    k = k_ref[...]
    v = v_ref[...]
    bt, l, h = q.shape

    if l > h:
        # Cheaper to scale q (L*H elements) than the (L, L) scores.
        q = q * scale

    # --- scores: batched q @ k^T, contracting last axes directly (no transpose),
    #     bf16 operands into the MXU, f32 accumulation.
    s = jax.lax.dot_general(
        q, k,
        dimension_numbers=(((2,), (2,)), ((0,), (0,))),
        preferred_element_type=jnp.float32,
    )                                                           # (Bt, L, L) f32
    if l <= h:
        s = s * scale

    # --- numerically stable softmax over keys (f32 elementwise; reciprocal on EUP).
    s = s - jnp.max(s, axis=-1, keepdims=True)
    e = jnp.exp(s)
    w = e * pl.reciprocal(jnp.sum(e, axis=-1, keepdims=True), approx=True)

    # --- attention output: batched w @ v.  Only cast the probabilities to bf16
    #     when L packs cleanly into bf16 sublanes; otherwise stay f32.
    if l % 16 == 0:
        att = jax.lax.dot_general(
            w.astype(v.dtype), v,
            dimension_numbers=(((2,), (1,)), ((0,), (0,))),
            preferred_element_type=jnp.float32,
        )
    else:
        att = jax.lax.dot_general(
            w, v.astype(jnp.float32),
            dimension_numbers=(((2,), (1,)), ((0,), (0,))),
            preferred_element_type=jnp.float32,
        )                                                       # (Bt, L, H) f32

    # --- final linear layer: fold (Bt, L) so the MXU sees one larger matmul.
    att2d = att.reshape(bt * l, h).astype(wo_ref.dtype)
    y = jnp.dot(att2d, wo_ref[...], preferred_element_type=jnp.float32)
    y = y + bo_ref[...]                                         # (Bt*L, H) f32

    o_ref[...] = y.reshape(bt, l, h).astype(o_ref.dtype)


def self_attention(q, k, v, wo, bo, *, block_b=None, compute_dtype=jnp.bfloat16):
    """Pallas forward of SelfAttention: final_linear(simple_attention(q, k, v)).

    q, k, v : (B, L, H)
    wo      : (H, H) stored as (in_features, out_features) (= torch weight.T)
    bo      : (H,)   final linear bias
    """
    B, L, H = q.shape
    out_dtype = q.dtype
    scale = 1.0 / math.sqrt(H)

    # bf16 inputs: the MXU consumes bf16 anyway, so feeding bf16 halves the
    # HBM->VMEM DMA bytes for the three largest operands.
    qc = q.astype(compute_dtype)
    kc = k.astype(compute_dtype)
    vc = v.astype(compute_dtype)
    wo_c = wo.astype(compute_dtype)
    bo_2d = bo.reshape(1, H).astype(jnp.float32)

    in_bytes = jnp.dtype(compute_dtype).itemsize
    out_bytes = jnp.dtype(out_dtype).itemsize

    vmem_cap = _vmem_capacity_bytes()
    vmem_budget = int(vmem_cap * 0.6)              # headroom for compiler scratch
    if block_b is None:
        block_b = _pick_block_b(B, L, H, in_bytes, out_bytes, vmem_budget)
    assert B % block_b == 0, "block_b must divide B"
    grid = (B // block_b,)

    vmem_limit = min(int(vmem_cap * 0.75), 96 * 1024 * 1024)

    # Block last dims equal the full array extents -> legal without padding,
    # no extra HBM passes for pad/slice.
    act_spec = pl.BlockSpec((block_b, L, H), lambda b: (b, 0, 0))

    grid_spec = pltpu.PrefetchScalarGridSpec(
        num_scalar_prefetch=0,
        grid=grid,
        in_specs=[
            act_spec, act_spec, act_spec,               # q, k, v
            pl.BlockSpec((H, H), lambda b: (0, 0)),     # wo
            pl.BlockSpec((1, H), lambda b: (0, 0)),     # bo
        ],
        out_specs=act_spec,
    )

    return pl.pallas_call(
        functools.partial(self_attention_kernel, scale=scale),
        out_shape=jax.ShapeDtypeStruct((B, L, H), out_dtype),
        grid_spec=grid_spec,
        compiler_params=pltpu.CompilerParams(
            dimension_semantics=("parallel",),
            vmem_limit_bytes=vmem_limit,
        ),
    )(qc, kc, vc, wo_c, bo_2d)


def _reference(q, k, v, wo, bo):
    """Pure-JAX f32 reference of the PyTorch module (for a loose sanity check)."""
    H = q.shape[-1]
    s = jnp.einsum("bld,bsd->bls", q, k) / math.sqrt(H)
    w = jax.nn.softmax(s, axis=-1)
    att = jnp.einsum("bls,bsd->bld", w, v)
    return att @ wo + bo


if __name__ == "__main__":
    B, L, H = 2, 8, 32  # batch, seq, hidden

    key = jax.random.PRNGKey(0)
    kq, kk, kv_, kw, kb = jax.random.split(key, 5)
    q = jax.random.normal(kq, (B, L, H), jnp.float32)
    k = jax.random.normal(kk, (B, L, H), jnp.float32)
    v = jax.random.normal(kv_, (B, L, H), jnp.float32)
    # torch.nn.Linear(H, H): weight (out, in), bias (out,) — stored here as W.T (in, out).
    wo = 0.02 * jax.random.normal(kw, (H, H), jnp.float32)
    bo = 0.02 * jax.random.normal(kb, (H,), jnp.float32)

    out = self_attention(q, k, v, wo, bo)
    jax.block_until_ready(out)
    assert out.shape == (B, L, H)
    assert out.dtype == q.dtype

    ref = _reference(q, k, v, wo, bo)
    # bf16 inputs / bf16 MXU operands (f32 accumulation) -> loose tolerance vs f32 reference.
    assert jnp.allclose(out, ref, rtol=3e-2, atol=3e-2), "mismatch vs JAX reference"

    print("KERNEL_OK")
</pallas_src>

<mosaic_0001>
module attributes {stable_mosaic.version = 11 : i64} {
  func.func @self_attention_kernel(%arg0: i32, %arg1: memref<1x8x32xbf16, #tpu.memory_space<vmem>>, %arg2: memref<1x8x32xbf16, #tpu.memory_space<vmem>>, %arg3: memref<1x8x32xbf16, #tpu.memory_space<vmem>>, %arg4: memref<32x32xbf16, #tpu.memory_space<vmem>>, %arg5: memref<1x32xf32, #tpu.memory_space<vmem>>, %arg6: memref<1x8x32xf32, #tpu.memory_space<vmem>>) attributes {dimension_semantics = [#tpu.dimension_semantics<parallel>], iteration_bounds = array<i64: 2>, scalar_prefetch = 0 : i64, scratch_operands = 0 : i64, tpu.core_type = #tpu.core_type<tc>, window_params = [{transform_indices = @transform_0, window_bounds = array<i64: 1, 8, 32>}, {transform_indices = @transform_1, window_bounds = array<i64: 1, 8, 32>}, {transform_indices = @transform_2, window_bounds = array<i64: 1, 8, 32>}, {pipeline_mode = #tpu.pipeline_mode<synchronous>, transform_indices = @transform_3, window_bounds = array<i64: 32, 32>}, {pipeline_mode = #tpu.pipeline_mode<synchronous>, transform_indices = @transform_4, window_bounds = array<i64: 1, 32>}, {transform_indices = @transform_5, window_bounds = array<i64: 1, 8, 32>}]} {
    %c0 = arith.constant 0 : index
    %c0_0 = arith.constant 0 : index
    %c0_1 = arith.constant 0 : index
    %0 = vector.load %arg1[%c0, %c0_0, %c0_1] : memref<1x8x32xbf16, #tpu.memory_space<vmem>>, vector<1x8x32xbf16>
    %c0_2 = arith.constant 0 : index
    %c0_3 = arith.constant 0 : index
    %c0_4 = arith.constant 0 : index
    %1 = vector.load %arg2[%c0_2, %c0_3, %c0_4] : memref<1x8x32xbf16, #tpu.memory_space<vmem>>, vector<1x8x32xbf16>
    %c0_5 = arith.constant 0 : index
    %c0_6 = arith.constant 0 : index
    %c0_7 = arith.constant 0 : index
    %2 = vector.load %arg3[%c0_5, %c0_6, %c0_7] : memref<1x8x32xbf16, #tpu.memory_space<vmem>>, vector<1x8x32xbf16>
    %cst = arith.constant dense<0.000000e+00> : vector<1x8x8xf32>
    %3 = tpu.matmul %0, %1, %cst {dimension_numbers = #tpu.dot_dimension_numbers<[2], [2], [1], [1], [0, 0, 0, 1, 1, 1], [0], [0]>} : vector<1x8x32xbf16>, vector<1x8x32xbf16>, vector<1x8x8xf32> -> vector<1x8x8xf32>
    %cst_8 = arith.constant 0.176776692 : f32
    %4 = vector.broadcast %cst_8 : f32 to vector<1x8x8xf32>
    %5 = arith.mulf %3, %4 : vector<1x8x8xf32>
    %cst_9 = arith.constant dense<0xFF800000> : vector<1x8xf32>
    %6 = vector.multi_reduction <maximumf>, %5, %cst_9 [2] : vector<1x8x8xf32> to vector<1x8xf32>
    %7 = vector.shape_cast %6 : vector<1x8xf32> to vector<1x8x1xf32>
    %8 = vector.broadcast %7 : vector<1x8x1xf32> to vector<1x8x8xf32>
    %9 = arith.subf %5, %8 : vector<1x8x8xf32>
    %10 = math.exp %9 : vector<1x8x8xf32>
    %cst_10 = arith.constant dense<0.000000e+00> : vector<1x8xf32>
    %11 = vector.multi_reduction <add>, %10, %cst_10 [2] : vector<1x8x8xf32> to vector<1x8xf32>
    %12 = vector.shape_cast %11 : vector<1x8xf32> to vector<1x8x1xf32>
    %13 = tpu.reciprocal %12 {approx = true} : vector<1x8x1xf32> -> vector<1x8x1xf32>
    %14 = vector.broadcast %13 : vector<1x8x1xf32> to vector<1x8x8xf32>
    %15 = arith.mulf %10, %14 : vector<1x8x8xf32>
    %16 = arith.extf %2 : vector<1x8x32xbf16> to vector<1x8x32xf32>
    %cst_11 = arith.constant dense<0.000000e+00> : vector<1x8x32xf32>
    %17 = tpu.matmul %15, %16, %cst_11 {dimension_numbers = #tpu.dot_dimension_numbers<[2], [1], [1], [2], [0, 0, 0, 1, 1, 2], [0], [0]>} : vector<1x8x8xf32>, vector<1x8x32xf32>, vector<1x8x32xf32> -> vector<1x8x32xf32>
    %18 = vector.shape_cast %17 : vector<1x8x32xf32> to vector<8x32xf32>
    %19 = arith.truncf %18 : vector<8x32xf32> to vector<8x32xbf16>
    %c0_12 = arith.constant 0 : index
    %c0_13 = arith.constant 0 : index
    %20 = vector.load %arg4[%c0_12, %c0_13] : memref<32x32xbf16, #tpu.memory_space<vmem>>, vector<32x32xbf16>
    %cst_14 = arith.constant dense<0.000000e+00> : vector<8x32xf32>
    %21 = tpu.matmul %19, %20, %cst_14 {dimension_numbers = #tpu.dot_dimension_numbers<[1], [0], [0], [1], [0, 0, 1, 1], [], []>} : vector<8x32xbf16>, vector<32x32xbf16>, vector<8x32xf32> -> vector<8x32xf32>
    %c0_15 = arith.constant 0 : index
    %c0_16 = arith.constant 0 : index
    %22 = vector.load %arg5[%c0_15, %c0_16] : memref<1x32xf32, #tpu.memory_space<vmem>>, vector<1x32xf32>
    %23 = vector.broadcast %22 : vector<1x32xf32> to vector<8x32xf32>
    %24 = arith.addf %21, %23 : vector<8x32xf32>
    %25 = vector.shape_cast %24 : vector<8x32xf32> to vector<1x8x32xf32>
    %c0_17 = arith.constant 0 : index
    %c0_18 = arith.constant 0 : index
    %c0_19 = arith.constant 0 : index
    %26 = vector.load %arg6[%c0_17, %c0_18, %c0_19] : memref<1x8x32xf32, #tpu.memory_space<vmem>>, vector<1x8x32xf32>
    tpu.vector_store %arg6[%c0_17, %c0_18, %c0_19], %25 {strides = array<i32>} : memref<1x8x32xf32, #tpu.memory_space<vmem>>, vector<1x8x32xf32>,
    return
  }
  func.func @transform_0(%arg0: i32) -> (i32, i32, i32) {
    %c0_i32 = arith.constant 0 : i32
    %c0_i32_0 = arith.constant 0 : i32
    %c0_i32_1 = arith.constant 0 : i32
    return %arg0, %c0_i32, %c0_i32_0 : i32, i32, i32
  }
  func.func @transform_1(%arg0: i32) -> (i32, i32, i32) {
    %c0_i32 = arith.constant 0 : i32
    %c0_i32_0 = arith.constant 0 : i32
    %c0_i32_1 = arith.constant 0 : i32
    return %arg0, %c0_i32, %c0_i32_0 : i32, i32, i32
  }
  func.func @transform_2(%arg0: i32) -> (i32, i32, i32) {
    %c0_i32 = arith.constant 0 : i32
    %c0_i32_0 = arith.constant 0 : i32
    %c0_i32_1 = arith.constant 0 : i32
    return %arg0, %c0_i32, %c0_i32_0 : i32, i32, i32
  }
  func.func @transform_3(%arg0: i32) -> (i32, i32) {
    %c0_i32 = arith.constant 0 : i32
    %c0_i32_0 = arith.constant 0 : i32
    %c0_i32_1 = arith.constant 0 : i32
    return %c0_i32, %c0_i32_0 : i32, i32
  }
  func.func @transform_4(%arg0: i32) -> (i32, i32) {
    %c0_i32 = arith.constant 0 : i32
    %c0_i32_0 = arith.constant 0 : i32
    %c0_i32_1 = arith.constant 0 : i32
    return %c0_i32, %c0_i32_0 : i32, i32
  }
  func.func @transform_5(%arg0: i32) -> (i32, i32, i32) {
    %c0_i32 = arith.constant 0 : i32
    %c0_i32_0 = arith.constant 0 : i32
    %c0_i32_1 = arith.constant 0 : i32
    return %arg0, %c0_i32, %c0_i32_0 : i32, i32, i32
  }
}

</mosaic_0001>

<bundles_post_ra>
// kernel: tpu_custom_call.1
= control target key start
LH: loop header
LB: loop body
LE: loop exit
PB: predicated region body
PF: predicated region fallthrough
CT: control target
= control target key end

     0   :  { %s1326_s0 = inlined_call_operand.hbm [shape: bf16[2,8,32], index: 0, kind: input, shape index: {}]   ;;  %s1327_s1 = inlined_call_operand.hbm [shape: bf16[2,8,32], index: 1, kind: input, shape index: {}]   ;;  %s1328_s2 = inlined_call_operand.hbm [shape: bf16[2,8,32], index: 2, kind: input, shape index: {}]   ;;  %s1329_s3 = inlined_call_operand.hbm [shape: bf16[32,32], index: 3, kind: input, shape index: {}]   ;;  %s1330_s4 = inlined_call_operand.vmem [shape: f32[1,32], index: 4, kind: input, shape index: {}]   ;;  %s1331_s5 = inlined_call_operand.hbm [shape: f32[2,8,32], index: 5, kind: output, shape index: {}]  }
   0x1   :  { %1348 = sst [smem:[#allocation20_spill]] %s1327_s1 }
   0x2   :  { %1349 = sst [smem:[#allocation21_spill]] %s1331_s5 }
   0x3   :  { %10 = vsyncpa [#allocation3], 0 }
   0x4   :  { %12 = vsyncpa [#allocation3 + $0x1], 0 }
   0x5   :  { %13 = vsyncpa [#allocation6], 0 }
   0x6   :  { %15 = vsyncpa [#allocation6 + $0x1], 0 }
   0x7   :  { %16 = vsyncpa [#allocation9], 0 }
   0x8   :  { %17 = vsyncpa [#allocation4], 0 }
   0x9   :  { %19 = vsyncpa [#allocation4 + $0x1], 0  ;;  %s1031_s18 = smov 0   ;;  %s1033_s19 = smov 0  }
   0xa   :  { %s1035_s20 = smov 0   ;;  %s1037_s21 = smov 0  }
   0xb LB: > { %1350 = sst [smem:[#allocation15_spill]] %s978_s18  ;;  %s1052_s22 = sadd.s32 1, %s990_s21   ;;  %s990_s21 = sphi %s1037_s21, %s1379_s21   ;;  %s986_s20 = sphi %s1035_s20, %s1383_s20   ;;  %s982_s19 = sphi %s1033_s19, %s1382_s19   ;;  %s978_s18 = sphi %s1031_s18, %s1381_s18  }
   0xc   : > { %1351 = sst [smem:[#allocation16_spill]] %s990_s21  ;;  %s32_s23 = sadd.s32 1, %s986_s20 }
   0xd   : > { %1352 = sst [smem:[#allocation17_spill]] %s1052_s22  ;;  %s29_s24 = ssub.s32 %s990_s21, %s1052_s22 }
   0xe   : > { %p1332_p0 = scmp.ne.s32.totalorder %s986_s20, %s982_s19  ;;  %p30_p1 = scmp.eq.s32.totalorder %s29_s24, 0 }
   0xf   : > { %p40_p2 = scmp.eq.s32.totalorder %s990_s21, 0  ;;  %p752_p4 = scmp.lt.s32.totalorder %s990_s21, 2 }
  0x10   : > { %s1063_s25 = scalar_select %p30_p1, %s986_s20, %s32_s23  }
  0x11   : > { %p41_p5 = por %p40_p2, %p1332_p0  ;;  %s1333_s26 = sand.u32 1, %s986_s20  }
  0x12   : > { %1353 = sst [smem:[#allocation18_spill]] %s1063_s25  ;;  %s1071_s27 = sshll.u32 %s1333_s26, 2 }
  0x13   : > { %s1074_s28 = sshll.u32 %s990_s21, 6  ;;  %p1076_p6 = pnand %p752_p4, %p41_p5 }
  0x14   : > { %s223_s30 = sand.u32 1, %s990_s21   ;;  %s1355_s1 = sld [smem:[#allocation20_spill]] }
  0x15   : > { %s1354_s29 = scalar_select %p1076_p6, 1, 0 }
  0x16   : > { %s227_s9 = scalar_lea.vmem [#allocation5], %s1071_s27  ;;  %s1090_s11 = scalar_lea.sflag [#allocation6], %s223_s30 }
  0x17   : > { %s234_s10 = sshll.u32 %s227_s9, 4  ;;  %p1096_p8 = pneg %p1076_p6  ;;  %s1088_s10 = int_to_ptr.vmem [resolvable:$true] %s234_s10 }
  0x19   : > { %s1356_s13 = scalar_select %p1096_p8, 1, 0 }
  0x1a   : > { %s1085_s8 = scalar_lea.hbm %s1355_s1, %s1074_s28  ;;  %s803_s16 = scalar_lea.hbm %s1355_s1, 128 }
  0x1b   : > { %s798_s12 = scalar_lea.hbm %s1085_s8, 64  ;;  %p804_p11 = scmp.lt.u32.totalorder %s1085_s8, %s1355_s1 }
  0x1c   : > { %p799_p7 = scmp.ne.s32.totalorder %s1085_s8, %s798_s12  ;;  %p805_p12 = scmp.lt.u32.totalorder %s803_s16, %s798_s12 }
  0x1d   : > { %p807_p1 = scmp.lt.u32.totalorder %s798_s12, %s1085_s8 }
  0x1e   : > { %p801_p9 = pnand %p1096_p8, %p799_p7  ;;  %p806_p13 = por %p805_p12, %p804_p11 }
  0x20   : > { %p802_p10 = pneg %p801_p9  ;;  %p808_p2 = por %p807_p1, %p806_p13 }
  0x22   : > { %p809_p4 = pnand %p808_p2, %p802_p10 }
  0x24   : > { %812 = shalt.err (!%p809_p4)
}
  0x25   : > { %s813_s24 = scalar_lea.vmem %s1088_s10, 64  ;;  %s992_s30 = smov [#allocation5]  }
  0x26   : > { %p814_p5 = scmp.ne.s32.totalorder %s1088_s10, %s813_s24  ;;  %s818_s6 = sshll.u32 %s992_s30, 4  ;;  %s819_s6 = int_to_ptr.vmem [resolvable:$false] %s818_s6 }
  0x27   : > { %s820_s7 = scalar_lea.vmem %s819_s6, 128  ;;  %p821_p3 = scmp.lt.s32.totalorder %s1088_s10, %s819_s6 }
  0x28   : > { %p816_p7 = pnand %p814_p5, %p1096_p8  ;;  %p822_p0 = scmp.lt.s32.totalorder %s820_s7, %s813_s24 }
  0x2a   : > { %p817_p9 = pneg %p816_p7  ;;  %p823_p11 = por %p822_p0, %p821_p3 }
  0x2c   : > { %p824_p12 = pnand %p823_p11, %p817_p9 }
  0x2e   : > { %827 = shalt.err (!%p824_p12)
}
  0x2f   : > { %743 = dma.hbm_to_vmem [thread:$0]  (!%p1076_p6), %s1085_s8, 64, %s1088_s10, %s1090_s11  }
  0x30   : > { %s1121_s9 = sadd.s32 4294967295, %s990_s21   ;;  %s669_s12 = sadd.s32 4294967294, %s990_s21  }
  0x31   : > { %p45_p0 = scmp.ne.s32.totalorder %s982_s19, %s978_s18  ;;  %p1338_p3 = scmp.eq.s32.totalorder %s1121_s9, 0 }
  0x32   : > { %p163_p10 = scmp.eq.s32.totalorder %s1121_s9, 1  ;;  %p169_p13 = scmp.eq.s32.totalorder %s669_s12, 1 }
  0x33   : > { %p1130_p1 = por %p1338_p3, %p45_p0  ;;  %p670_p2 = scmp.ge.s32.totalorder %s990_s21, 1 }
  0x34   : > { %p1358_p4 = scmp.ne.s32.totalorder %s986_s20, %s982_s19  ;;  %p1142_p7 = por %p169_p13, %p45_p0 }
  0x35   : > { %s1357_s14 = scalar_select %p1130_p1, 1, 0 }
  0x36   : > { %p1138_p5 = por %p163_p10, %p1358_p4  ;;  %p176_p9 = scmp.lt.s32.totalorder %s990_s21, 3 }
  0x37   : > { %s1360_s10 = scalar_select %p1142_p7, 1, 0 }
  0x38   : > { %s1359_s8 = scalar_select %p1138_p5, 1, 0 }
  0x39   : > { %1361 = sst [smem:[#allocation19_spill]] %s1360_s10  ;;  %p1147_p11 = pnand %p670_p2, %p176_p9 }
  0x3a   : > { %s993_s16 = smov [#allocation8]   ;;  %s1159_s30 = scalar_lea.hbm %s1326_s0, %s1074_s28 }
  0x3b   : > { %s1362_s15 = scalar_select %p1147_p11, 1, 0 }
  0x3c   : > { %s188_s17 = sshll.u32 %s993_s16, 4  ;;  %p733_p12 = pneg %p1147_p11  ;;  %s1151_s17 = int_to_ptr.vmem [resolvable:$true] %s188_s17 }
  0x3d   : > { %s209_s7 = scalar_lea.vmem [#allocation2], %s1071_s27  ;;  %s1174_s1 = scalar_lea.hbm %s1328_s2, %s1074_s28 }
  0x3e   : > { %p1163_p0 = pnand %p733_p12, %p1338_p3  ;;  %s216_s12 = sshll.u32 %s209_s7, 4  ;;  %s1168_s12 = int_to_ptr.vmem [resolvable:$true] %s216_s12 }
  0x3f   : > { %s828_s23 = scalar_lea.hbm %s1329_s3, 256 }
  0x40   : > { %p829_p10 = scmp.ne.s32.totalorder %s1329_s3, %s828_s23  ;;  %p830_p13 = pneg %p1163_p0 }
  0x41   : > { %p835_p9 = scmp.lt.u32.totalorder %s828_s23, %s1329_s3 }
  0x42   : > { %p831_p2 = pnand %p830_p13, %p829_p10 }
  0x44   : > { %p832_p4 = pneg %p831_p2 }
  0x46   : > { %p837_p12 = pnand %p835_p9, %p832_p4 }
  0x48   : > { %840 = shalt.err (!%p837_p12)
}
  0x49   : > { %s841_s26 = scalar_lea.vmem %s1151_s17, 256  ;;  %p849_p1 = scmp.lt.s32.totalorder %s1151_s17, %s1151_s17 }
  0x4a   : > { %p842_p3 = scmp.ne.s32.totalorder %s1151_s17, %s841_s26  ;;  %p850_p11 = scmp.lt.s32.totalorder %s841_s26, %s841_s26 }
  0x4c   : > { %p844_p7 = pnand %p842_p3, %p830_p13  ;;  %p851_p6 = por %p850_p11, %p849_p1 }
  0x4e   : > { %p845_p5 = pneg %p844_p7 }
  0x50   : > { %p852_p8 = pnand %p851_p6, %p845_p5 }
  0x52   : > { %855 = shalt.err (!%p852_p8)
}
  0x53   : > { %s994_s21 = smov 64   ;;  %s995_s22 = smov 4  }
  0x54   : > { %736 = dma.hbm_to_vmem [thread:$0]  (!%p1163_p0), %s1329_s3, 256, %s1151_s17, [#allocation9], %s994_s21, %s994_s21, %s995_s22  }
  0x55   : > { %s1364_s10 = sand.u32 1, %s986_s20   ;;  %s856_s23 = scalar_lea.hbm %s1159_s30, 64 }
  0x56   : > { %s206_s16 = scalar_lea.sflag [#allocation3], %s1364_s10  ;;  %p857_p6 = scmp.ne.s32.totalorder %s1159_s30, %s856_s23 }
  0x57   : > { %p1365_p8 = scmp.ne.s32.totalorder %s1356_s13, 0  ;;  %s861_s26 = scalar_lea.hbm %s1326_s0, 128 }
  0x58   : > { %p862_p5 = scmp.lt.u32.totalorder %s1159_s30, %s1326_s0  ;;  %p863_p7 = scmp.lt.u32.totalorder %s861_s26, %s856_s23 }
  0x59   : > { %p859_p3 = pnand %p857_p6, %p1365_p8  ;;  %p865_p10 = scmp.lt.u32.totalorder %s856_s23, %s1159_s30 }
  0x5a   : > { %p864_p11 = por %p863_p7, %p862_p5 }
  0x5b   : > { %p860_p1 = pneg %p859_p3 }
  0x5c   : > { %p866_p13 = por %p865_p10, %p864_p11 }
  0x5e   : > { %p867_p0 = pnand %p866_p13, %p860_p1 }
  0x60   : > { %870 = shalt.err (!%p867_p0)
}
  0x61   : > { %s871_s17 = scalar_lea.vmem %s1168_s12, 64  ;;  %s996_s6 = smov [#allocation2]  }
  0x62   : > { %p872_p2 = scmp.ne.s32.totalorder %s1168_s12, %s871_s17  ;;  %s876_s21 = sshll.u32 %s996_s6, 4  ;;  %s877_s21 = int_to_ptr.vmem [resolvable:$false] %s876_s21 }
  0x63   : > { %s878_s5 = scalar_lea.vmem %s877_s21, 128  ;;  %p879_p12 = scmp.lt.s32.totalorder %s1168_s12, %s877_s21 }
  0x64   : > { %p874_p4 = pnand %p872_p2, %p1365_p8  ;;  %p880_p6 = scmp.lt.s32.totalorder %s878_s5, %s871_s17 }
  0x66   : > { %p875_p9 = pneg %p874_p4  ;;  %p881_p3 = por %p880_p6, %p879_p12 }
  0x68   : > { %p882_p5 = pnand %p881_p3, %p875_p9 }
  0x6a   : > { %885 = shalt.err (!%p882_p5)
}
  0x6b   : > { %p1366_p1 = scmp.ne.s32.totalorder %s1354_s29, 0  ;;  %s245_s18 = scalar_lea.vmem [#allocation7], %s1071_s27 }
  0x6c   : > { %s252_s22 = sshll.u32 %s245_s18, 4  ;;  %s886_s25 = scalar_lea.hbm %s1174_s1, 64  ;;  %s253_s22 = int_to_ptr.vmem [resolvable:$true] %s252_s22 }
  0x6d   : > { %740 = dma.hbm_to_vmem [thread:$0]  (!%p1366_p1), %s1159_s30, 64, %s1168_s12, %s206_s16  }
  0x6e   : > { %p887_p7 = scmp.ne.s32.totalorder %s1174_s1, %s886_s25  ;;  %s891_s23 = scalar_lea.hbm %s1328_s2, 128 }
  0x6f   : > { %p892_p13 = scmp.lt.u32.totalorder %s1174_s1, %s1328_s2  ;;  %p893_p0 = scmp.lt.u32.totalorder %s891_s23, %s886_s25 }
  0x70   : > { %p889_p11 = pnand %p887_p7, %p1365_p8  ;;  %p895_p4 = scmp.lt.u32.totalorder %s886_s25, %s1174_s1 }
  0x71   : > { %p894_p2 = por %p893_p0, %p892_p13 }
  0x72   : > { %p890_p10 = pneg %p889_p11 }
  0x73   : > { %p896_p9 = por %p895_p4, %p894_p2 }
  0x75   : > { %p897_p12 = pnand %p896_p9, %p890_p10 }
  0x77   : > { %900 = shalt.err (!%p897_p12)
}
  0x78   : > { %s901_s27 = scalar_lea.vmem %s253_s22, 64  ;;  %s997_s30 = smov [#allocation7]  }
  0x79   : > { %p902_p6 = scmp.ne.s32.totalorder %s253_s22, %s901_s27  ;;  %s906_s12 = sshll.u32 %s997_s30, 4  ;;  %s907_s12 = int_to_ptr.vmem [resolvable:$false] %s906_s12 }
  0x7a   : > { %s908_s16 = scalar_lea.vmem %s907_s12, 128  ;;  %p909_p7 = scmp.lt.s32.totalorder %s253_s22, %s907_s12 }
  0x7b   : > { %p904_p3 = pnand %p902_p6, %p1365_p8  ;;  %p910_p11 = scmp.lt.s32.totalorder %s908_s16, %s901_s27 }
  0x7d   : > { %p905_p5 = pneg %p904_p3  ;;  %p911_p1 = por %p910_p11, %p909_p7 }
  0x7f   : > { %p912_p0 = pnand %p911_p1, %p905_p5 }
  0x81   : > { %915 = shalt.err (!%p912_p0)
}
  0x82   : > { %p1367_p13 = scmp.ne.s32.totalorder %s1354_s29, 0  ;;  %p1368_p10 = scmp.ne.s32.totalorder %s1362_s15, 0 }
  0x83   : > { %s1242_s13 = sand.u32 (!%p1368_p10), 1, %s982_s19   ;;  %p1369_p8 = scmp.ne.s32.totalorder (!%p1368_p10), %s1357_s14, 0 }
  0x84   : > { %746 = dma.hbm_to_vmem [thread:$0]  (!%p1367_p13), %s1174_s1, 64, %s253_s22, %s1090_s11  }
  0x85   : > { %261 = sbr.rel (%p1368_p10) target bundleno = 1127 (0x467), region = 40  ;;  %s1245_s26 = sshll.u32 (!%p1368_p10), %s1242_s13, 2 }
  0x86   : > { %s264_s17 = scalar_lea.sflag (!%p1368_p10), [#allocation3], %s1242_s13  ;;  %s267_s6 = scalar_lea.vmem (!%p1368_p10), [#allocation2], %s1245_s26 }
  0x8c   : > { %961 = dma.done.wait (%p1369_p8), %s264_s17, 64  }
  0x8d   : > { %963 = vsyncadd (%p1369_p8), %s264_s17, 4294967232  ;;  %s272_s1 = sand.u32 1, %s1121_s9   ;;  %s276_s11 = scalar_lea.vmem [#allocation5], %s1245_s26 }
  0x8e   : > { %s273_s29 = scalar_lea.sflag [#allocation6], %s272_s1 }
  0x8f   : > { %965 = dma.done.wait (%p1369_p8), %s273_s29, 128  }
  0x90   : > { %967 = vsyncadd (%p1369_p8), %s273_s29, 4294967168  ;;  %s285_s15 = scalar_lea.vmem [#allocation7], %s1245_s26  ;;  %p1370_p1 = scmp.eq.s32.totalorder %s1121_s9, 0 }
  0x92   : > { %969 = dma.done.wait (%p1370_p1), [#allocation9], 256   ;;  %p1371_p2 = pmov %p1370_p1 }
  0x93   : > { %v998_v0 = vmov 0.0   ;;  %vm999_vm0 = vmmov 0   ;;  %vm330_vm1 = vcmask 261120   ;;  %v328_v1 = vld [vmem:[%s276_s11] sm:$0xf]  ;;  %vm378_vm2 = vcmask 64512  }
  0x94   : > { %971 = vsyncadd (%p1371_p2), [#allocation9], 4294967040  ;;  %702 = vmatprep.subr.bf16.mxu0 %v998_v0  ;;  %704 = vmatprep.mubr.msk.bf16.mxu0 %vm999_vm0, %v998_v0  ;;  %v335_v2 = vsel %vm330_vm1, %v328_v1, 0  ;;  %v327_v3 = vld [vmem:[%s267_s6] sm:$0xf]  ;;  %v792_v19 = vld [vmem:[#allocation8] sm:$0xff]  }
  0x95   : > { %708 = vmatprep.subr.mxu1 %v998_v0  ;;  %710 = vmatprep.mubr.msk.f32.mxu1 %vm999_vm0, %v998_v0  ;;  %v329_v15 = vld [vmem:[%s285_s15] sm:$0xf]  ;;  %v793_v21 = vld [vmem:[#allocation8 + $0x8] sm:$0xff]   ;;  %s684_s14 = sshll.u32 %s1242_s13, 3  ;;  %s692_s18 = sshll.u32 %s1121_s9, 7 }
  0x96   : > { %703 = vmatpush3.bf16.xpose.msra.mxu0 %v335_v2  ;;  %v390_v16 = vunpack.c.l.bf16 %v329_v15  ;;  %v687_v25 = vld [vmem:[%s1330_s4] ss:$0 sm:$0xff]  ;;  %s325_s22 = scalar_lea.vmem [#allocation10], %s684_s14  ;;  %s1372_s23 = sld [smem:[#allocation21_spill]] }
  0x97   : > { %s546_s25 = sshll.u32 %s325_s22, 4  ;;  %s533_s9 = scalar_lea.sflag [#allocation4], %s1242_s13  ;;  %s1283_s25 = int_to_ptr.vmem [resolvable:$true] %s546_s25 }
  0x98   : > { %709 = vmatpush3.msra.mxu1 %v390_v16  ;;  %s916_s7 = scalar_lea.vmem %s1283_s25, 128  ;;  %p1373_p9 = scmp.ne.s32.totalorder %s1359_s8, 0 }
  0x99   : > { %713 = vmatprep.subr.bf16.mxu1 %v998_v0  ;;  %p917_p4 = scmp.ne.s32.totalorder %s1283_s25, %s916_s7  ;;  %s1000_s27 = smov [#allocation10]  }
  0x9a   : > { %s920_s30 = sshll.u32 %s1000_s27, 4  ;;  %s921_s30 = int_to_ptr.vmem [resolvable:$false] %s920_s30 }
  0x9b   : > { %p918_p12 = pnand %p917_p4, %p1373_p9  ;;  %s922_s12 = scalar_lea.vmem %s921_s30, 256 }
  0x9c   : > { %s1281_s24 = scalar_lea.hbm %s1372_s23, %s692_s18  ;;  %p923_p3 = scmp.lt.s32.totalorder %s1283_s25, %s921_s30 }
  0x9d   : > { %705 = vmatmul.mubr.msk.bf16.vlgmr.msra.gmra.mrb[0].mxu0 %vm330_vm1, %v327_v3  ;;  %p919_p6 = pneg %p918_p12  ;;  %p924_p5 = scmp.lt.s32.totalorder %s922_s12, %s916_s7 }
  0x9f   : > { %p925_p7 = por %p924_p5, %p923_p3 }
  0xa1   : > { %p926_p11 = pnand %p925_p7, %p919_p6 }
 0x170   : > { %v371_v4 = vpop.f32.mrb[0].mxu0 }
 0x171   : > { %v377_v5 = vmul.f32 0.17677669, %v371_v4  ;;  %v706_v6 = vpop.f32.mrb[1].mxu0 }
 0x172   : > { %v374_v7 = vpop.f32.mrb[2].mxu0 }
 0x173   : > { %v707_v8 = vpop.f32.mrb[3].mxu0  ;;  %v379_v9 = vsel %vm378_vm2, %v377_v5, -inf }
 0x174   : > { %380 = vmax.xlane.f32.xlu0 %v379_v9 }
 0x201   : > { %v381_v10 = vpop.xlane.xlu0 %380 }
 0x202   : > { %v382_v11 = vsub.f32 %v377_v5, %v381_v10 }
 0x204   : > { %v383_v12 = vmul.f32 1.442695, %v382_v11 }
 0x206   : > { %794 = vpow2.f32 %v383_v12 }
 0x210   : > { %v795_v13 = vpop.eup %794 }
 0x211   : > { %v385_v14 = vsel %vm378_vm2, %v795_v13, 0.0 }
 0x212   : > { %386 = vadd.xlane.f32.xlu0 %v385_v14 }
 0x29f   : > { %v387_v17 = vpop.xlane.xlu0 %386 }
 0x2a0   : > { %796 = vrcp.f32 %v387_v17 }
 0x2aa   : > { %v797_v18 = vpop.eup %796 }
 0x2ab   : > { %v389_v20 = vmul.f32 %v797_v18, %v795_v13 }
 0x2ad   : > { %711 = vmatmul.mubr.msk.f32.vlgmr.msra.gmra.mrb[0].mxu1 %vm378_vm2, %v389_v20 }
 0x2ae   : > { %714 = vmatpush3.bf16.msra.mxu1 %v792_v19  ;;  %717 = vmatprep.mubr.msk.bf16.mxu1 %vm999_vm0, %v998_v0 }
 0x2af   : > { %715 = vmatprep.subr.bf16.mxu1 %v998_v0 }
 0x2b2   : > { %716 = vmatpush3.bf16.msra.mxu1 %v793_v21 }
 0x380   : > { %v460_v22 = vpop.f32.mrb[0].mxu1 }
 0x381   : > { %v464_v23 = vpack.c.bf16 %v460_v22, %v460_v22  ;;  %v712_v24 = vpop.f32.mrb[1].mxu1 }
 0x383   : > { %718 = vmatmul.mubr.msk.bf16.vlgmr.msra.gmra.mrb[4].mxu1 %vm330_vm1, %v464_v23 }
 0x456   : > { %v525_v26 = vpop.f32.mrb[4].mxu1 }
 0x457   : > { %v526_v27 = vadd.f32 %v687_v25, %v525_v26  ;;  %v719_v28 = vpop.f32.mrb[5].mxu1 }
 0x458   : > { %v528_v29 = vpop.f32.mrb[6].mxu1 }
 0x459   : > { %v720_v30 = vpop.f32.mrb[7].mxu1  ;;  %531 = vst.msk [vmem:[%s325_s22] sm:$0xff] %vm330_vm1, %v526_v27 }
 0x45a   : > { %929 = shalt.err (!%p926_p11)
}
 0x45b   : > { %s930_s16 = scalar_lea.hbm %s1281_s24, 128  ;;  %s934_s17 = scalar_lea.hbm %s1372_s23, 256 }
 0x45c   : > { %p931_p0 = scmp.ne.s32.totalorder %s1281_s24, %s930_s16  ;;  %p935_p8 = scmp.lt.u32.totalorder %s1281_s24, %s1372_s23 }
 0x45d   : > { %p936_p1 = scmp.lt.u32.totalorder %s934_s17, %s930_s16  ;;  %p938_p4 = scmp.lt.u32.totalorder %s930_s16, %s1281_s24 }
 0x45e   : > { %p932_p13 = pnand %p931_p0, %p1373_p9 }
 0x45f   : > { %p937_p2 = por %p936_p1, %p935_p8 }
 0x460   : > { %p933_p10 = pneg %p932_p13 }
 0x461   : > { %p939_p12 = por %p938_p4, %p937_p2 }
 0x463   : > { %p940_p6 = pnand %p939_p12, %p933_p10 }
 0x465   : > { %943 = shalt.err (!%p940_p6)
}
 0x466   : > { %731 = dma.vmem_to_hbm [thread:$0]  (%p1373_p9), %s1283_s25, 128, %s1281_s24, %s533_s9  }
 0x467 PF: > { %s1374_s29 = sld [smem:[#allocation15_spill]]  ;;  %s1375_s11 = sld [smem:[#allocation19_spill]] }
 0x468   : > { %s1376_s15 = sld [smem:[#allocation16_spill]] }
 0x46d   : > { %s558_s14 = sand.u32 1, %s1374_s29   ;;  %p1377_p3 = scmp.ne.s32.totalorder %s1375_s11, 0 }
 0x46e   : > { %p1378_p5 = scmp.ge.s32.totalorder %s1376_s15, 2  ;;  %s559_s21 = scalar_lea.sflag [#allocation4], %s558_s14 }
 0x470   : > { %p748_p7 = pnand %p1378_p5, %p1377_p3 }
 0x472   : > { %973 = dma.done.wait (!%p748_p7), %s559_s21, 128  }
 0x473   : > { %975 = vsyncadd (!%p748_p7), %s559_s21, 4294967168  ;;  %s1379_s21 = sld [smem:[#allocation17_spill]]  ;;  %s1380_s5 = sld [smem:[#allocation18_spill]] }
 0x474   : > { %s1381_s18 = smov %s982_s19  ;;  %s1382_s19 = smov %s986_s20 }
 0x479   : > { %p22_p11 = scmp.ge.s32.totalorder %s1379_s21, 4   ;;  %s1383_s20 = smov %s1380_s5 }
 0x47b   :  { %24 = sbr.rel (!%p22_p11) target bundleno = 11 (0xb), region = 113 }
 0x482   :  { %564 = vsyncpa [#allocation3], 1 }
 0x483   :  { %566 = vsyncpa [#allocation3 + $0x1], 1 }
 0x484   :  { %567 = vsyncpa [#allocation6], 1 }
 0x485   :  { %569 = vsyncpa [#allocation6 + $0x1], 1 }
 0x486   :  { %570 = vsyncpa [#allocation9], 1 }
 0x487   :  { %571 = vsyncpa [#allocation4], 1 }
 0x488   :  { %573 = vsyncpa [#allocation4 + $0x1], 1 }

</bundles_post_ra>
